<compile_context>
chip_gen: v7x
topology: tpu7x:2x2x1
jax: 0.10.0
libtpu: 0.0.40
codegen_flags: <defaults>
</compile_context>

<pallas_src>
import functools

import jax
import jax.numpy as jnp
from jax import lax
from jax.experimental import pallas as pl
from jax.experimental.pallas import tpu as pltpu

_EPS = 1e-6


def _round_up(v, m):
    return ((v + m - 1) // m) * m


# ---------------------------------------------------------------------------
# Kernels
# ---------------------------------------------------------------------------
def _ln_strip_kernel(x_ref, a_ref, b_ref, o_ref, *,
                     inv_m, k, d, rows_per_chunk, num_chunks, unroll):
    """One full-row column strip (lane-packed when k > 1).

    Pass 1 accumulates per-column sum / sum-of-squares in row chunks; stats
    fold into per-column (scale, shift); pass 2 re-loads each chunk in its
    native dtype and writes out = x * scale + shift.
    """
    td = x_ref.shape[-1]
    r = rows_per_chunk

    if num_chunks == 1:
        x = x_ref[...].astype(jnp.float32)
        col_sum = jnp.sum(x, axis=0, keepdims=True)
        col_sumsq = jnp.sum(x * x, axis=0, keepdims=True)
    else:
        def acc_body(i, carry):
            s, ss = carry
            r0 = pl.multiple_of(i * r, 8)
            xc = x_ref[pl.ds(r0, r), :].astype(jnp.float32)
            return (s + jnp.sum(xc, axis=0, keepdims=True),
                    ss + jnp.sum(xc * xc, axis=0, keepdims=True))

        col_sum, col_sumsq = lax.fori_loop(
            0, num_chunks, acc_body,
            (jnp.zeros((1, td), jnp.float32), jnp.zeros((1, td), jnp.float32)),
            unroll=unroll)

    if k > 1:
        # Combine the k packed segments: after the matmul every lane c holds
        # the per-feature total of feature (c % d), still in packed layout.
        # A constant 0/1 matrix on the MXU avoids cross-lane shuffles.
        rows_i = lax.broadcasted_iota(jnp.int32, (td, td), 0)
        cols_i = lax.broadcasted_iota(jnp.int32, (td, td), 1)
        comb = ((rows_i % d) == (cols_i % d)).astype(jnp.float32)
        col_sum = jnp.dot(col_sum, comb, preferred_element_type=jnp.float32)
        col_sumsq = jnp.dot(col_sumsq, comb, preferred_element_type=jnp.float32)

    mean = col_sum * inv_m
    var = jnp.maximum(col_sumsq * inv_m - mean * mean, 0.0)   # unbiased=False
    inv_std = lax.rsqrt(var + _EPS)                           # EUP, (1, td)
    scale = a_ref[...].astype(jnp.float32) * inv_std          # (1, td)
    shift = b_ref[...].astype(jnp.float32) - mean * scale     # (1, td)

    if num_chunks == 1:
        o_ref[...] = (x * scale + shift).astype(o_ref.dtype)
    else:
        # Hoist the (1, td) -> (r, td) broadcasts out of the per-chunk loop.
        scale_b = jnp.broadcast_to(scale, (r, td))
        shift_b = jnp.broadcast_to(shift, (r, td))

        def out_body(i, carry):
            r0 = pl.multiple_of(i * r, 8)
            xc = x_ref[pl.ds(r0, r), :].astype(jnp.float32)
            o_ref[pl.ds(r0, r), :] = (xc * scale_b + shift_b).astype(o_ref.dtype)
            return carry

        lax.fori_loop(0, num_chunks, out_body, 0, unroll=unroll)


def _ln_two_pass_kernel(x_ref, a_ref, b_ref, o_ref,
                        sum_ref, sumsq_ref, scale_ref, shift_ref, *, inv_m):
    """Fallback for M too large to hold a full column strip in VMEM.

    grid = (D strips, phase, M tiles):
      phase 0: accumulate per-column sum / sumsq for the strip,
      phase 1: apply the fused (scale, shift) and stream the output tiles.
    """
    p = pl.program_id(1)
    k = pl.program_id(2)

    @pl.when((p == 0) & (k == 0))
    def _():
        sum_ref[...] = jnp.zeros_like(sum_ref)
        sumsq_ref[...] = jnp.zeros_like(sumsq_ref)

    @pl.when(p == 0)
    def _():
        x = x_ref[...].astype(jnp.float32)
        sum_ref[...] += jnp.sum(x, axis=0, keepdims=True)
        sumsq_ref[...] += jnp.sum(x * x, axis=0, keepdims=True)

    @pl.when((p == 1) & (k == 0))
    def _():
        mean = sum_ref[...] * inv_m
        var = jnp.maximum(sumsq_ref[...] * inv_m - mean * mean, 0.0)
        inv_std = lax.rsqrt(var + _EPS)
        scale_ref[...] = a_ref[...].astype(jnp.float32) * inv_std
        shift_ref[...] = b_ref[...].astype(jnp.float32) - mean * scale_ref[...]

    @pl.when(p == 1)
    def _():
        x = x_ref[...].astype(jnp.float32)
        o_ref[...] = (x * scale_ref[...] + shift_ref[...]).astype(o_ref.dtype)


# ---------------------------------------------------------------------------
# Wrapper / tiling policy
# ---------------------------------------------------------------------------
def _vmem_capacity_bytes():
    try:
        return int(pltpu.get_tpu_info().vmem_capacity_bytes)
    except Exception:
        return 64 * 1024 * 1024  # assume the smallest per-core VMEM (v7x)


def _col_tile_candidates(D):
    if D % 128 != 0:
        return [D]                      # small / irregular D: one full strip
    return [td for td in range(D, 0, -128) if D % td == 0]


def _pick_rows(rows, max_chunk=512):
    """Row-chunk size and (possibly padded) row count; chunk multiple of 8."""
    for r in (512, 256, 128, 64, 32, 16, 8):
        if r <= max_chunk and r <= rows and rows % r == 0:
            return r, rows
    if rows <= max_chunk:
        r = max(8, _round_up(rows, 8))
        return r, r
    r = min(256, max_chunk)
    return r, _round_up(rows, r)


def _pad_rows(x2d, rows):
    m = x2d.shape[0]
    if rows == m:
        return x2d
    return jnp.pad(x2d, ((0, rows - m), (0, 0)))


def layer_norm_pallas(x, a, b, *, col_tile=None, row_chunk=None,
                      force_two_pass=False, row_tile=None):
    """x: (B, S, D); a, b broadcastable to (1, 1, D). Returns (B, S, D)."""
    B, S, D = x.shape
    M = B * S
    x2d = x.reshape(M, D)
    a2d = a.reshape(1, D)
    b2d = b.reshape(1, D)

    itemsize = x.dtype.itemsize
    vmem_cap = _vmem_capacity_bytes()
    vmem_limit = int(0.85 * vmem_cap)
    budget = int(0.75 * vmem_limit)     # headroom for Mosaic internals

    def step_bytes(rows, cols):
        # double-buffered input + double-buffered output; chunked accumulation
        # keeps f32 temps bounded so no per-element f32 term is needed.
        return rows * cols * 4 * itemsize

    inv_m = 1.0 / M

    # ---- small-D lane-packing path (the module's native D, e.g. 32) --------
    if D < 128 and 128 % D == 0 and not force_two_pass and col_tile is None:
        k = 128 // D
        prows = -(-M // k)                           # packed rows needed
        r, prows_pad = _pick_rows(prows)
        if step_bytes(prows_pad, k * D) <= budget:
            num_chunks = prows_pad // r
            m_pad = prows_pad * k
            x_packed = _pad_rows(x2d, m_pad).reshape(prows_pad, k * D)
            a_packed = jnp.tile(a2d, (1, k))
            b_packed = jnp.tile(b2d, (1, k))
            out_packed = pl.pallas_call(
                functools.partial(
                    _ln_strip_kernel, inv_m=inv_m, k=k, d=D,
                    rows_per_chunk=r, num_chunks=num_chunks,
                    unroll=num_chunks <= 8),
                out_shape=jax.ShapeDtypeStruct((prows_pad, k * D), x.dtype),
                grid=(1,),
                in_specs=[
                    pl.BlockSpec((prows_pad, k * D), lambda i: (0, 0)),
                    pl.BlockSpec((1, k * D), lambda i: (0, 0)),
                    pl.BlockSpec((1, k * D), lambda i: (0, 0)),
                ],
                out_specs=pl.BlockSpec((prows_pad, k * D), lambda i: (0, 0)),
                compiler_params=pltpu.CompilerParams(
                    dimension_semantics=("arbitrary",),
                    vmem_limit_bytes=vmem_limit),
            )(x_packed, a_packed, b_packed)
            out2d = out_packed.reshape(m_pad, D)[:M]
            return out2d.reshape(B, S, D)
        # TODO(synk): huge-M tiny-D shapes fall through to the (unpacked)
        # two-pass path; a packed, core-parallel M-split would be faster.

    # ---- main path: full-row column strips, chunked single HBM read --------
    r, m_pad = _pick_rows(M)
    if row_chunk is not None:
        assert row_chunk % 8 == 0 and row_chunk >= 8
        r = row_chunk
        m_pad = _round_up(M, r)
    num_chunks = m_pad // r

    td = None
    if col_tile is not None:
        assert D % col_tile == 0 and (col_tile % 128 == 0 or col_tile == D)
        td = col_tile
    elif not force_two_pass:
        fitting = [c for c in _col_tile_candidates(D)
                   if step_bytes(m_pad, c) <= budget]
        # Prefer >= 4 grid steps (pipelining), then >= 2 (v7x dual-TC); among
        # those take the widest strip (fewer masked stores / step overhead).
        for min_grid in (4, 2, 1):
            pref = [c for c in fitting if D // c >= min_grid]
            if pref:
                td = pref[0]
                break

    if td is not None and not force_two_pass:
        x_pad = _pad_rows(x2d, m_pad)
        out2d = pl.pallas_call(
            functools.partial(
                _ln_strip_kernel, inv_m=inv_m, k=1, d=td,
                rows_per_chunk=r, num_chunks=num_chunks,
                unroll=num_chunks <= 8),
            out_shape=jax.ShapeDtypeStruct((m_pad, D), x.dtype),
            grid=(D // td,),
            in_specs=[
                pl.BlockSpec((m_pad, td), lambda i: (0, i)),
                pl.BlockSpec((1, td), lambda i: (0, i)),
                pl.BlockSpec((1, td), lambda i: (0, i)),
            ],
            out_specs=pl.BlockSpec((m_pad, td), lambda i: (0, i)),
            compiler_params=pltpu.CompilerParams(
                dimension_semantics=("parallel",),
                vmem_limit_bytes=vmem_limit),
        )(x_pad, a2d, b2d)
        return out2d[:M].reshape(B, S, D)

    # ---- fallback: two sweeps over M tiles, stats carried in VMEM scratch --
    td = _col_tile_candidates(D)[-1]            # narrowest strip (128 or D)
    if row_tile is not None:
        assert row_tile % 8 == 0
        tm = row_tile
        m_pad = _round_up(M, tm)
    else:
        tm, m_pad = _pick_rows(M)
    x_pad = _pad_rows(x2d, m_pad)

    out2d = pl.pallas_call(
        functools.partial(_ln_two_pass_kernel, inv_m=inv_m),
        out_shape=jax.ShapeDtypeStruct((m_pad, D), x.dtype),
        grid=(D // td, 2, m_pad // tm),
        in_specs=[
            pl.BlockSpec((tm, td), lambda i, p, k: (k, i)),
            pl.BlockSpec((1, td), lambda i, p, k: (0, i)),
            pl.BlockSpec((1, td), lambda i, p, k: (0, i)),
        ],
        # Output block index is pinned to tile 0 during the stats sweep so the
        # (never-written) resident buffer is not flushed; phase 1 writes every
        # tile before its block index changes.
        out_specs=pl.BlockSpec((tm, td), lambda i, p, k: (k * p, i)),
        scratch_shapes=[pltpu.VMEM((1, td), jnp.float32) for _ in range(4)],
        compiler_params=pltpu.CompilerParams(
            dimension_semantics=("parallel", "arbitrary", "arbitrary"),
            vmem_limit_bytes=vmem_limit),
    )(x_pad, a2d, b2d)
    return out2d[:M].reshape(B, S, D)


# ---------------------------------------------------------------------------
# Reference
# ---------------------------------------------------------------------------
def layer_norm_ref(x, a, b):
    mean = jnp.mean(x, axis=(0, 1), keepdims=True)
    var = jnp.var(x, axis=(0, 1), keepdims=True)   # ddof=0 == unbiased=False
    return a * (x - mean) / jnp.sqrt(var + _EPS) + b


if __name__ == "__main__":
    k0, k1, k2, k3, k4 = jax.random.split(jax.random.PRNGKey(0), 5)

    # --- module-native shape (batch=2, seq=8, hidden=32): packed small-D path
    B, S, D = 2, 8, 32
    x = jax.random.normal(k0, (B, S, D), dtype=jnp.float32)
    a = jnp.ones((1, 1, D), dtype=jnp.float32)     # nn.Parameter(torch.ones(d))
    b = jnp.zeros((1, 1, D), dtype=jnp.float32)    # nn.Parameter(torch.zeros(d))
    out = jax.block_until_ready(layer_norm_pallas(x, a, b))
    ref = layer_norm_ref(x, a, b)
    assert out.shape == (B, S, D)
    assert jnp.allclose(out, ref, atol=1e-4, rtol=1e-4), "packed small-D path failed"

    # --- small-D with awkward M (exercises zero-row padding in packed path) -
    B3, S3, D3 = 3, 5, 32
    x3 = jax.random.normal(k2, (B3, S3, D3), dtype=jnp.float32)
    a3 = jnp.full((1, 1, D3), 0.5, dtype=jnp.float32)
    b3 = jnp.full((1, 1, D3), -0.25, dtype=jnp.float32)
    out3 = jax.block_until_ready(layer_norm_pallas(x3, a3, b3))
    assert jnp.allclose(out3, layer_norm_ref(x3, a3, b3), atol=1e-4, rtol=1e-4), \
        "padded packed path failed"

    # --- lane-strip path (D multiple of 128, multi-step parallel grid) ------
    B2, S2, D2 = 4, 64, 256
    x2 = jax.random.normal(k1, (B2, S2, D2), dtype=jnp.float32)
    a2 = 1.0 + 0.1 * jax.random.normal(k3, (1, 1, D2), dtype=jnp.float32)
    b2 = 0.1 * jax.random.normal(k4, (1, 1, D2), dtype=jnp.float32)
    ref2 = layer_norm_ref(x2, a2, b2)

    out2 = jax.block_until_ready(layer_norm_pallas(x2, a2, b2))
    assert jnp.allclose(out2, ref2, atol=1e-4, rtol=1e-4), "strip path failed"

    # --- chunked-accumulation path (forced small row chunk) -----------------
    out2c = jax.block_until_ready(
        layer_norm_pallas(x2, a2, b2, col_tile=128, row_chunk=64))
    assert jnp.allclose(out2c, ref2, atol=1e-4, rtol=1e-4), "chunked path failed"

    # --- two-sweep fallback (forced, exercises the large-M code path) -------
    out2t = jax.block_until_ready(
        layer_norm_pallas(x2, a2, b2, force_two_pass=True, row_tile=64))
    assert jnp.allclose(out2t, ref2, atol=1e-4, rtol=1e-4), "two-pass path failed"

    print("KERNEL_OK")
</pallas_src>

<mosaic_0001>
module attributes {stable_mosaic.version = 11 : i64} {
  func.func @_ln_strip_kernel(%arg0: i32, %arg1: memref<8x128xf32, #tpu.memory_space<vmem>>, %arg2: memref<1x128xf32, #tpu.memory_space<vmem>>, %arg3: memref<1x128xf32, #tpu.memory_space<vmem>>, %arg4: memref<8x128xf32, #tpu.memory_space<vmem>>) attributes {dimension_semantics = [#tpu.dimension_semantics<arbitrary>], iteration_bounds = array<i64: 1>, scalar_prefetch = 0 : i64, scratch_operands = 0 : i64, tpu.core_type = #tpu.core_type<tc>, window_params = [{pipeline_mode = #tpu.pipeline_mode<synchronous>, transform_indices = @transform_0, window_bounds = array<i64: 8, 128>}, {pipeline_mode = #tpu.pipeline_mode<synchronous>, transform_indices = @transform_1, window_bounds = array<i64: 1, 128>}, {pipeline_mode = #tpu.pipeline_mode<synchronous>, transform_indices = @transform_2, window_bounds = array<i64: 1, 128>}, {pipeline_mode = #tpu.pipeline_mode<synchronous>, transform_indices = @transform_3, window_bounds = array<i64: 8, 128>}]} {
    %c0 = arith.constant 0 : index
    %c0_0 = arith.constant 0 : index
    %0 = vector.load %arg1[%c0, %c0_0] : memref<8x128xf32, #tpu.memory_space<vmem>>, vector<8x128xf32>
    %cst = arith.constant dense<0.000000e+00> : vector<128xf32>
    %1 = vector.multi_reduction <add>, %0, %cst [0] : vector<8x128xf32> to vector<128xf32>
    %2 = vector.shape_cast %1 : vector<128xf32> to vector<1x128xf32>
    %3 = arith.mulf %0, %0 : vector<8x128xf32>
    %cst_1 = arith.constant dense<0.000000e+00> : vector<128xf32>
    %4 = vector.multi_reduction <add>, %3, %cst_1 [0] : vector<8x128xf32> to vector<128xf32>
    %5 = vector.shape_cast %4 : vector<128xf32> to vector<1x128xf32>
    %6 = tpu.iota {dimensions = array<i32: 0>} : vector<128x128xi32>
    %7 = tpu.iota {dimensions = array<i32: 1>} : vector<128x128xi32>
    %c32_i32 = arith.constant 32 : i32
    %c0_i32 = arith.constant 0 : i32
    %8 = arith.cmpi eq, %c32_i32, %c0_i32 : i32
    %c1_i32 = arith.constant 1 : i32
    %9 = arith.select %8, %c1_i32, %c32_i32 : i32
    %10 = vector.broadcast %9 : i32 to vector<128x128xi32>
    %11 = arith.remsi %6, %10 : vector<128x128xi32>
    %c0_i32_2 = arith.constant 0 : i32
    %12 = vector.broadcast %c0_i32_2 : i32 to vector<128x128xi32>
    %13 = arith.cmpi ne, %11, %12 : vector<128x128xi32>
    %c0_i32_3 = arith.constant 0 : i32
    %14 = vector.broadcast %c0_i32_3 : i32 to vector<128x128xi32>
    %15 = arith.cmpi slt, %11, %14 : vector<128x128xi32>
    %c0_i32_4 = arith.constant 0 : i32
    %16 = arith.cmpi slt, %9, %c0_i32_4 : i32
    %17 = vector.broadcast %16 : i1 to vector<128x128xi1>
    %18 = vector.broadcast %17 : vector<128x128xi1> to vector<128x128xi1>
    %19 = arith.xori %15, %18 : vector<128x128xi1>
    %20 = arith.andi %19, %13 : vector<128x128xi1>
    %21 = vector.broadcast %9 : i32 to vector<128x128xi32>
    %22 = arith.addi %11, %21 : vector<128x128xi32>
    %23 = arith.select %20, %22, %11 : vector<128x128xi1>, vector<128x128xi32>
    %c32_i32_5 = arith.constant 32 : i32
    %c0_i32_6 = arith.constant 0 : i32
    %24 = arith.cmpi eq, %c32_i32_5, %c0_i32_6 : i32
    %c1_i32_7 = arith.constant 1 : i32
    %25 = arith.select %24, %c1_i32_7, %c32_i32_5 : i32
    %26 = vector.broadcast %25 : i32 to vector<128x128xi32>
    %27 = arith.remsi %7, %26 : vector<128x128xi32>
    %c0_i32_8 = arith.constant 0 : i32
    %28 = vector.broadcast %c0_i32_8 : i32 to vector<128x128xi32>
    %29 = arith.cmpi ne, %27, %28 : vector<128x128xi32>
    %c0_i32_9 = arith.constant 0 : i32
    %30 = vector.broadcast %c0_i32_9 : i32 to vector<128x128xi32>
    %31 = arith.cmpi slt, %27, %30 : vector<128x128xi32>
    %c0_i32_10 = arith.constant 0 : i32
    %32 = arith.cmpi slt, %25, %c0_i32_10 : i32
    %33 = vector.broadcast %32 : i1 to vector<128x128xi1>
    %34 = vector.broadcast %33 : vector<128x128xi1> to vector<128x128xi1>
    %35 = arith.xori %31, %34 : vector<128x128xi1>
    %36 = arith.andi %35, %29 : vector<128x128xi1>
    %37 = vector.broadcast %25 : i32 to vector<128x128xi32>
    %38 = arith.addi %27, %37 : vector<128x128xi32>
    %39 = arith.select %36, %38, %27 : vector<128x128xi1>, vector<128x128xi32>
    %40 = arith.cmpi eq, %23, %39 : vector<128x128xi32>
    %41 = arith.extui %40 : vector<128x128xi1> to vector<128x128xi32>
    %42 = arith.sitofp %41 : vector<128x128xi32> to vector<128x128xf32>
    %cst_11 = arith.constant dense<0.000000e+00> : vector<1x128xf32>
    %43 = tpu.matmul %2, %42, %cst_11 {dimension_numbers = #tpu.dot_dimension_numbers<[1], [0], [0], [1], [0, 0, 1, 1], [], []>} : vector<1x128xf32>, vector<128x128xf32>, vector<1x128xf32> -> vector<1x128xf32>
    %cst_12 = arith.constant dense<0.000000e+00> : vector<1x128xf32>
    %44 = tpu.matmul %5, %42, %cst_12 {dimension_numbers = #tpu.dot_dimension_numbers<[1], [0], [0], [1], [0, 0, 1, 1], [], []>} : vector<1x128xf32>, vector<128x128xf32>, vector<1x128xf32> -> vector<1x128xf32>
    %cst_13 = arith.constant 6.250000e-02 : f32
    %45 = vector.broadcast %cst_13 : f32 to vector<1x128xf32>
    %46 = arith.mulf %43, %45 : vector<1x128xf32>
    %cst_14 = arith.constant 6.250000e-02 : f32
    %47 = vector.broadcast %cst_14 : f32 to vector<1x128xf32>
    %48 = arith.mulf %44, %47 : vector<1x128xf32>
    %49 = arith.mulf %46, %46 : vector<1x128xf32>
    %50 = arith.subf %48, %49 : vector<1x128xf32>
    %cst_15 = arith.constant 0.000000e+00 : f32
    %51 = vector.broadcast %cst_15 : f32 to vector<1x128xf32>
    %52 = arith.maximumf %50, %51 : vector<1x128xf32>
    %cst_16 = arith.constant 9.99999997E-7 : f32
    %53 = vector.broadcast %cst_16 : f32 to vector<1x128xf32>
    %54 = arith.addf %52, %53 : vector<1x128xf32>
    %55 = math.rsqrt %54 : vector<1x128xf32>
    %c0_17 = arith.constant 0 : index
    %c0_18 = arith.constant 0 : index
    %56 = vector.load %arg2[%c0_17, %c0_18] : memref<1x128xf32, #tpu.memory_space<vmem>>, vector<1x128xf32>
    %57 = arith.mulf %56, %55 : vector<1x128xf32>
    %c0_19 = arith.constant 0 : index
    %c0_20 = arith.constant 0 : index
    %58 = vector.load %arg3[%c0_19, %c0_20] : memref<1x128xf32, #tpu.memory_space<vmem>>, vector<1x128xf32>
    %59 = arith.mulf %46, %57 : vector<1x128xf32>
    %60 = arith.subf %58, %59 : vector<1x128xf32>
    %61 = vector.broadcast %57 : vector<1x128xf32> to vector<8x128xf32>
    %62 = arith.mulf %0, %61 : vector<8x128xf32>
    %63 = vector.broadcast %60 : vector<1x128xf32> to vector<8x128xf32>
    %64 = arith.addf %62, %63 : vector<8x128xf32>
    %c0_21 = arith.constant 0 : index
    %c0_22 = arith.constant 0 : index
    %65 = vector.load %arg4[%c0_21, %c0_22] : memref<8x128xf32, #tpu.memory_space<vmem>>, vector<8x128xf32>
    tpu.vector_store %arg4[%c0_21, %c0_22], %64 {strides = array<i32>} : memref<8x128xf32, #tpu.memory_space<vmem>>, vector<8x128xf32>,
    return
  }
  func.func @transform_0(%arg0: i32) -> (i32, i32) {
    %c0_i32 = arith.constant 0 : i32
    %c0_i32_0 = arith.constant 0 : i32
    %c0_i32_1 = arith.constant 0 : i32
    return %c0_i32, %c0_i32_0 : i32, i32
  }
  func.func @transform_1(%arg0: i32) -> (i32, i32) {
    %c0_i32 = arith.constant 0 : i32
    %c0_i32_0 = arith.constant 0 : i32
    %c0_i32_1 = arith.constant 0 : i32
    return %c0_i32, %c0_i32_0 : i32, i32
  }
  func.func @transform_2(%arg0: i32) -> (i32, i32) {
    %c0_i32 = arith.constant 0 : i32
    %c0_i32_0 = arith.constant 0 : i32
    %c0_i32_1 = arith.constant 0 : i32
    return %c0_i32, %c0_i32_0 : i32, i32
  }
  func.func @transform_3(%arg0: i32) -> (i32, i32) {
    %c0_i32 = arith.constant 0 : i32
    %c0_i32_0 = arith.constant 0 : i32
    %c0_i32_1 = arith.constant 0 : i32
    return %c0_i32, %c0_i32_0 : i32, i32
  }
}

</mosaic_0001>

<bundles_post_ra>
// kernel: tpu_custom_call.1
= control target key start
LH: loop header
LB: loop body
LE: loop exit
PB: predicated region body
PF: predicated region fallthrough
CT: control target
= control target key end

     0   :  { %8 = vsyncpa [#allocation3], 0  ;;  %s954_s0 = inlined_call_operand.hbm [shape: f32[8,128], index: 0, kind: input, shape index: {}]   ;;  %s955_s1 = inlined_call_operand.vmem [shape: f32[1,128], index: 1, kind: input, shape index: {}]   ;;  %s956_s2 = inlined_call_operand.vmem [shape: f32[1,128], index: 2, kind: input, shape index: {}]   ;;  %s957_s3 = inlined_call_operand.hbm [shape: f32[8,128], index: 3, kind: output, shape index: {}]  }
   0x1   :  { %9 = vsyncpa [#allocation4], 0  ;;  %s750_s12 = smov [#allocation2]   ;;  %s702_s16 = scalar_lea.hbm %s954_s0, 128 }
   0x2   :  { %s16_s13 = sshll.u32 %s750_s12, 4  ;;  %p703_p0 = scmp.ne.s32.totalorder %s954_s0, %s702_s16  ;;  %s17_s13 = int_to_ptr.vmem [resolvable:$true] %s16_s13 }
   0x3   :  { %p706_p1 = scmp.lt.u32.totalorder %s702_s16, %s954_s0 }
   0x5   :  { %p708_p2 = pnand %p706_p1, %p703_p0 }
   0x7   :  { %711 = shalt.err (!%p708_p2)
}
   0x8   :  { %s712_s21 = scalar_lea.vmem %s17_s13, 128  ;;  %p717_p4 = scmp.lt.s32.totalorder %s17_s13, %s17_s13 }
   0x9   :  { %p713_p3 = scmp.ne.s32.totalorder %s17_s13, %s712_s21  ;;  %p718_p5 = scmp.lt.s32.totalorder %s712_s21, %s712_s21 }
   0xb   :  { %p719_p6 = por %p718_p5, %p717_p4 }
   0xd   :  { %p720_p7 = pnand %p719_p6, %p713_p3 }
   0xf   :  { %723 = shalt.err (!%p720_p7)
}
  0x10   :  { %19 = dma.hbm_to_vmem [thread:$0]  %s954_s0, 128, %s17_s13, [#allocation3]   ;;  %v41_v0 = vlaneseq }
  0x11   :  { %746 = dma.done.wait [#allocation3], 128  }
  0x12   :  { %747 = vsyncadd [#allocation3], 4294967168  ;;  %v751_v1 = vmov 0.0|0.0   ;;  %v790_v2 = vshrl.u32 %v41_v0, 7  ;;  %v59_v3 = vand.u32 127, %v41_v0  ;;  %vm752_vm0 = vmmov 0  }
  0x13   :  { %646 = vmatprep.subr.bf16.mxu0 %v751_v1  ;;  %670 = vmatprep.subr.bf16.mxu1 %v751_v1  ;;  %v753_v4 = vmov 0.0   ;;  %v754_v21 = vmov 1.0|1.0   ;;  %v834_v28 = vld [vmem:[#allocation2] sm:$0xff]  ;;  %s755_s27 = smov [#allocation5]  }
  0x14   :  { %608 = vmatprep.mubr.msk.f32.mxu0 %vm752_vm0, %v753_v4  ;;  %643 = vmatprep.mubr.msk.f32.mxu1 %vm752_vm0, %v753_v4  ;;  %v43_v5 = vadd.s32 8, %v790_v2  ;;  %v64_v6 = vand.u32 31, %v790_v2  ;;  %v794_v7 = vand.u32 31, %v59_v3  ;;  %v44_v8 = vadd.s32 16, %v790_v2  ;;  %s485_s28 = sshll.u32 %s755_s27, 4  ;;  %s486_s28 = int_to_ptr.vmem [resolvable:$true] %s485_s28 }
  0x15   :  { %v45_v9 = vadd.s32 24, %v790_v2  ;;  %v46_v10 = vadd.s32 32, %v790_v2  ;;  %v47_v11 = vadd.s32 40, %v790_v2  ;;  %v48_v15 = vadd.s32 48, %v790_v2  ;;  %p729_p9 = scmp.lt.s32.totalorder %s486_s28, %s486_s28 }
  0x16   :  { %v71_v12 = vand.u32 31, %v43_v5  ;;  %vm264_vm1 = vcmp.eq.s32.totalorder %v64_v6, %v794_v7  ;;  %v78_v13 = vand.u32 31, %v44_v8  ;;  %v49_v16 = vadd.s32 56, %v790_v2 }
  0x17   :  { %v85_v14 = vand.u32 31, %v45_v9  ;;  %v92_v18 = vand.u32 31, %v46_v10  ;;  %v99_v19 = vand.u32 31, %v47_v11  ;;  %v106_v22 = vand.u32 31, %v48_v15  ;;  %v461_v15 = vld [vmem:[%s956_s2] sm:$0x1] }
  0x18   :  { %vm265_vm2 = vcmp.eq.s32.totalorder %v71_v12, %v794_v7  ;;  %vm805_vm3 = vcmp.eq.s32.totalorder %v78_v13, %v794_v7  ;;  %v113_v23 = vand.u32 31, %v49_v16  ;;  %v50_v24 = vadd.s32 64, %v790_v2 }
  0x19   :  { %vm647_vm4 = vmpackc.low %vm265_vm2, %vm264_vm1  ;;  %vm810_vm5 = vcmp.eq.s32.totalorder %v85_v14, %v794_v7  ;;  %vm824_vm7 = vcmp.eq.s32.totalorder %v92_v18, %v794_v7  ;;  %vm829_vm8 = vcmp.eq.s32.totalorder %v99_v19, %v794_v7  ;;  %v51_v27 = vadd.s32 72, %v790_v2 }
  0x1a   :  { %648 = vmatpush3.bf16.msk.msra.mxu0 %vm647_vm4, %v754_v21  ;;  %672 = vmatpush3.bf16.msk.msra.mxu1 %vm647_vm4, %v754_v21  ;;  %vm650_vm6 = vmpackc.low %vm810_vm5, %vm805_vm3  ;;  %vm845_vm10 = vcmp.eq.s32.totalorder %v106_v22, %v794_v7  ;;  %vm850_vm11 = vcmp.eq.s32.totalorder %v113_v23, %v794_v7  ;;  %v120_v31 = vand.u32 31, %v50_v24  ;;  %v52_v33 = vadd.s32 80, %v790_v2 }
  0x1b   :  { %649 = vmatprep.subr.bf16.mxu0 %v751_v1  ;;  %673 = vmatprep.subr.bf16.mxu1 %v751_v1  ;;  %vm653_vm9 = vmpackc.low %vm829_vm8, %vm824_vm7  ;;  %v127_v32 = vand.u32 31, %v51_v27  ;;  %v53_v34 = vadd.s32 88, %v790_v2  ;;  %v34_v35 = vmul.f32 %v834_v28, %v834_v28  ;;  %v28_v36 = vrot.slane %v834_v28, 4 }
  0x1c   :  { %vm656_vm12 = vmpackc.low %vm850_vm11, %vm845_vm10  ;;  %v54_v38 = vadd.s32 96, %v790_v2  ;;  %v55_v39 = vadd.s32 104, %v790_v2  ;;  %vm870_vm13 = vcmp.eq.s32.totalorder %v120_v31, %v794_v7  ;;  %v134_v42 = vand.u32 31, %v52_v33 }
  0x1d   :  { %v35_v37 = vrot.slane %v34_v35, 4  ;;  %vm875_vm14 = vcmp.eq.s32.totalorder %v127_v32, %v794_v7  ;;  %v141_v43 = vand.u32 31, %v53_v34  ;;  %v29_v44 = vadd.f32 %v28_v36, %v834_v28 }
  0x1e   :  { %651 = vmatpush3.bf16.msk.msra.mxu0 %vm650_vm6, %v754_v21  ;;  %675 = vmatpush3.bf16.msk.msra.mxu1 %vm650_vm6, %v754_v21  ;;  %vm659_vm15 = vmpackc.low %vm875_vm14, %vm870_vm13  ;;  %v56_v46 = vadd.s32 112, %v790_v2  ;;  %v57_v47 = vadd.s32 120, %v790_v2  ;;  %vm891_vm0 = vcmp.eq.s32.totalorder %v134_v42, %v794_v7  ;;  %v148_v50 = vand.u32 31, %v54_v38 }
  0x1f   :  { %652 = vmatprep.subr.bf16.mxu0 %v751_v1  ;;  %676 = vmatprep.subr.bf16.mxu1 %v751_v1  ;;  %v36_v45 = vadd.f32 %v35_v37, %v34_v35  ;;  %vm896_vm1 = vcmp.eq.s32.totalorder %v141_v43, %v794_v7  ;;  %v155_v51 = vand.u32 31, %v55_v39  ;;  %v30_v52 = vrot.slane %v29_v44, 2 }
  0x20   :  { %vm662_vm2 = vmpackc.low %vm896_vm1, %vm891_vm0  ;;  %vm909_vm3 = vcmp.eq.s32.totalorder %v148_v50, %v794_v7  ;;  %v162_v56 = vand.u32 31, %v56_v46  ;;  %v169_v57 = vand.u32 31, %v57_v47  ;;  %v467_v12 = vsub.s32 0, %v790_v2 }
  0x21   :  { %v37_v53 = vrot.slane %v36_v45, 2  ;;  %vm914_vm4 = vcmp.eq.s32.totalorder %v155_v51, %v794_v7  ;;  %v31_v58 = vadd.f32 %v30_v52, %v29_v44 }
  0x22   :  { %654 = vmatpush3.bf16.msk.msra.mxu0 %vm653_vm9, %v754_v21  ;;  %678 = vmatpush3.bf16.msk.msra.mxu1 %vm653_vm9, %v754_v21  ;;  %vm665_vm5 = vmpackc.low %vm914_vm4, %vm909_vm3  ;;  %vm278_vm6 = vcmp.eq.s32.totalorder %v162_v56, %v794_v7  ;;  %vm279_vm7 = vcmp.eq.s32.totalorder %v169_v57, %v794_v7 }
  0x23   :  { %655 = vmatprep.subr.bf16.mxu0 %v751_v1  ;;  %679 = vmatprep.subr.bf16.mxu1 %v751_v1  ;;  %v38_v59 = vadd.f32 %v37_v53, %v36_v45  ;;  %v32_v60 = vrot.slane %v31_v58, 1  ;;  %vm668_vm8 = vmpackc.low %vm279_vm7, %vm278_vm6 }
  0x25   :  { %v39_v61 = vrot.slane %v38_v59, 1  ;;  %v33_v62 = vadd.f32 %v32_v60, %v31_v58 }
  0x26   :  { %657 = vmatpush3.bf16.msk.msra.mxu0 %vm656_vm12, %v754_v21  ;;  %681 = vmatpush3.bf16.msk.msra.mxu1 %vm656_vm12, %v754_v21 }
  0x27   :  { %658 = vmatprep.subr.bf16.mxu0 %v751_v1  ;;  %682 = vmatprep.subr.bf16.mxu1 %v751_v1  ;;  %v40_v63 = vadd.f32 %v39_v61, %v38_v59 }
  0x2a   :  { %660 = vmatpush3.bf16.msk.msra.mxu0 %vm659_vm15, %v754_v21  ;;  %684 = vmatpush3.bf16.msk.msra.mxu1 %vm659_vm15, %v754_v21 }
  0x2b   :  { %661 = vmatprep.subr.bf16.mxu0 %v751_v1  ;;  %685 = vmatprep.subr.bf16.mxu1 %v751_v1 }
  0x2e   :  { %663 = vmatpush3.bf16.msk.msra.mxu0 %vm662_vm2, %v754_v21  ;;  %687 = vmatpush3.bf16.msk.msra.mxu1 %vm662_vm2, %v754_v21 }
  0x2f   :  { %664 = vmatprep.subr.bf16.mxu0 %v751_v1  ;;  %688 = vmatprep.subr.bf16.mxu1 %v751_v1 }
  0x32   :  { %666 = vmatpush3.bf16.msk.msra.mxu0 %vm665_vm5, %v754_v21  ;;  %690 = vmatpush3.bf16.msk.msra.mxu1 %vm665_vm5, %v754_v21 }
  0x33   :  { %667 = vmatprep.subr.bf16.mxu0 %v751_v1  ;;  %691 = vmatprep.subr.bf16.mxu1 %v751_v1  ;;  %v459_v1 = vld [vmem:[%s955_s1] sm:$0x1]  ;;  %s724_s1 = scalar_lea.vmem %s486_s28, 128 }
  0x34   :  { %p725_p8 = scmp.ne.s32.totalorder %s486_s28, %s724_s1  ;;  %p730_p10 = scmp.lt.s32.totalorder %s724_s1, %s724_s1 }
  0x36   :  { %669 = vmatpush3.bf16.msk.msra.mxu0 %vm668_vm8, %v754_v21  ;;  %693 = vmatpush3.bf16.msk.msra.mxu1 %vm668_vm8, %v754_v21  ;;  %p731_p11 = por %p730_p10, %p729_p9 }
  0x38   :  { %p732_p12 = pnand %p731_p11, %p725_p8 }
  0x39   :  { %609 = vmatmul.mubr.f32.vlgmr.msra.gmra.mrb[0].mxu0 %v33_v62  ;;  %644 = vmatmul.mubr.f32.vlgmr.msra.gmra.mrb[0].mxu1 %v40_v63 }
 0x10c   :  { %v378_v0 = vpop.f32.mrb[0].mxu0  ;;  %v448_v3 = vpop.f32.mrb[0].mxu1 }
 0x10d   :  { %v452_v4 = vmul.f32 0.0625, %v378_v0  ;;  %v610_v5 = vpop.f32.mrb[1].mxu0  ;;  %v453_v6 = vmul.f32 0.0625, %v448_v3  ;;  %v645_v7 = vpop.f32.mrb[1].mxu1 }
 0x10f   :  { %v454_v8 = vmul.f32 %v452_v4, %v452_v4 }
 0x111   :  { %v455_v9 = vsub.f32 %v453_v6, %v454_v8 }
 0x113   :  { %v456_v10 = vmax.f32 %v455_v9, 0.0 }
 0x115   :  { %v457_v11 = vadd.f32 1e-06, %v456_v10 }
 0x117   :  { %700 = vrsqrt.f32 %v457_v11 }
 0x121   :  { %v701_v13 = vpop.eup %700 }
 0x122   :  { %v460_v14 = vmul.f32 %v701_v13, %v459_v1 }
 0x124   :  { %v462_v16 = vmul.f32 %v460_v14, %v452_v4  ;;  %v468_v17 = vrot.slane %v460_v14, %v467_v12 }
 0x126   :  { %v463_v18 = vsub.f32 %v461_v15, %v462_v16  ;;  %v470_v19 = vmul.f32 %v468_v17, %v834_v28 }
 0x128   :  { %v475_v20 = vrot.slane %v463_v18, %v467_v12 }
 0x12a   :  { %v477_v21 = vadd.f32 %v475_v20, %v470_v19 }
 0x12c   :  { %478 = vst [vmem:[#allocation5] sm:$0xff] %v477_v21 }
 0x12d   :  { %735 = shalt.err (!%p732_p12)
}
 0x12e   :  { %s736_s30 = scalar_lea.hbm %s957_s3, 128 }
 0x12f   :  { %p737_p13 = scmp.ne.s32.totalorder %s957_s3, %s736_s30  ;;  %p740_p0 = scmp.lt.u32.totalorder %s736_s30, %s957_s3 }
 0x131   :  { %p742_p1 = pnand %p740_p0, %p737_p13 }
 0x133   :  { %745 = shalt.err (!%p742_p1)
}
 0x134   :  { %488 = dma.vmem_to_hbm [thread:$0]  %s486_s28, 128, %s957_s3, [#allocation4]  }
 0x135   :  { %748 = dma.done.wait [#allocation4], 128  }
 0x136   :  { %749 = vsyncadd [#allocation4], 4294967168 }
 0x137   :  { %492 = vsyncpa [#allocation3], 1 }
 0x138   :  { %493 = vsyncpa [#allocation4], 1 }

</bundles_post_ra>
